<compile_context>
chip_gen: v7x
topology: tpu7x:2x2x1
jax: 0.10.0
libtpu: 0.0.40
codegen_flags: <defaults>
</compile_context>

<pallas_src>
import numpy as np
import jax
import jax.numpy as jnp
from jax.experimental import pallas as pl
from jax.experimental.pallas import tpu as pltpu


def _round_up(x, m):
    return ((x + m - 1) // m) * m


def _vmem_capacity_bytes():
    # Physical VMEM per TensorCore: 128 MiB on v5e/v6e, 64 MiB on v7x.
    try:
        cap = int(pltpu.get_tpu_info().vmem_capacity_bytes)
        if cap > 0:
            return cap
    except Exception:
        pass
    return 64 * 1024 * 1024  # conservative fallback (v7x per-TC)


def _proj_kernel_resident(x_ref, w1_ref, b1_ref, w2_ref, b2_ref, o_ref):
    # fc1: (tile_b, 2H) @ (2H, H) on the MXU, f32 accumulation.
    h = jnp.dot(x_ref[...], w1_ref[...], preferred_element_type=jnp.float32)
    h = jnp.maximum(h + b1_ref[...].astype(jnp.float32), 0.0)
    # fc2: H -> 1 as VPU multiply + cross-lane (XLU) reduction; keeps the MXU free.
    w2_row = w2_ref[...].astype(jnp.float32)             # (1, H)
    o = jnp.sum(h * w2_row, axis=-1, keepdims=True)      # (tile_b, 1)
    o_ref[...] = (o + b2_ref[...].astype(jnp.float32)).astype(o_ref.dtype)


def _proj_kernel_ktiled(x_ref, w1_ref, b1_ref, w2_ref, b2_ref, o_ref, acc_ref):
    # Reduction over the 2H axis; w1 streamed in (tile_k, H) chunks, acc stays in VMEM.
    k = pl.program_id(1)

    @pl.when(k == 0)
    def _():
        acc_ref[...] = jnp.zeros_like(acc_ref)

    acc_ref[...] += jnp.dot(x_ref[...], w1_ref[...],
                            preferred_element_type=jnp.float32)

    @pl.when(k == pl.num_programs(1) - 1)
    def _():
        h = jnp.maximum(acc_ref[...] + b1_ref[...].astype(jnp.float32), 0.0)
        w2_row = w2_ref[...].astype(jnp.float32)
        o = jnp.sum(h * w2_row, axis=-1, keepdims=True)
        o_ref[...] = (o + b2_ref[...].astype(jnp.float32)).astype(o_ref.dtype)


def projection_layer(x, w1, b1, w2, b2, *, tile_b=None, tile_k=None,
                     x_buffers=2, out_dtype=None, core_parallel=False):
    """x: (B, 2H); w1: (2H, H); b1: (H,); w2: (H, 1); b2: (1,). Returns (B, 1)."""
    B, two_h = x.shape
    H = w1.shape[1]
    assert two_h == 2 * H and w1.shape == (two_h, H)
    assert b1.shape == (H,) and w2.shape == (H, 1) and b2.shape == (1,)

    out_dtype = x.dtype if out_dtype is None else np.dtype(out_dtype)
    b1_2d = b1.reshape(1, H)
    w2_row = w2.reshape(1, H)
    b2_2d = b2.reshape(1, 1)

    # ---- VMEM accounting ----------------------------------------------------
    vmem_cap = _vmem_capacity_bytes()
    vmem_budget = int(vmem_cap * 0.70)        # headroom for compiler-internal scratch
    wbufs = 2                                 # Pallas double-buffers constant operands
    small_resident = wbufs * (b1_2d.size * b1.dtype.itemsize
                              + w2_row.size * w2.dtype.itemsize
                              + b2.dtype.itemsize)

    # ---- K tiling decision (large H / v7x) ----------------------------------
    if tile_k is None:
        tile_k = two_h
        if two_h % 128 == 0 and wbufs * two_h * H * w1.dtype.itemsize > vmem_budget // 4:
            tk = (vmem_budget // 4) // (wbufs * H * w1.dtype.itemsize)
            tk = max(128, (tk // 128) * 128)
            while two_h % tk:                 # must divide 2H so no padded-K garbage
                tk -= 128
            tile_k = tk
    use_k_tiling = tile_k < two_h
    if use_k_tiling:
        assert two_h % tile_k == 0, "tile_k must divide 2*hidden_dim"

    resident_bytes = wbufs * tile_k * H * w1.dtype.itemsize + small_resident
    per_row_bytes = (x_buffers * tile_k * x.dtype.itemsize    # streamed x buffers
                     + 4 * H                                  # f32 h / accumulator
                     + wbufs * out_dtype.itemsize)            # (tile_b, 1) output

    # ---- batch tile: as big as the budget allows, sublane-pack aligned ------
    pack = 8 * max(1, 4 // x.dtype.itemsize)  # 8 f32 / 16 bf16 / 32 int8-fp8
    if tile_b is None:
        avail = max(vmem_budget - resident_bytes, pack * per_row_bytes)
        tile_b = (avail // per_row_bytes) // pack * pack
    tile_b = max(pack, (tile_b // pack) * pack)
    tile_b = min(tile_b, _round_up(B, pack))

    need = resident_bytes + tile_b * per_row_bytes
    vmem_limit = int(max(32 << 20, min(vmem_cap * 0.9, need * 1.25 + (2 << 20))))

    batch_sem = pltpu.CORE_PARALLEL if core_parallel else pltpu.PARALLEL
    x_extra = {} if x_buffers == 2 else {"pipeline_mode": pl.Buffered(x_buffers)}

    if not use_k_tiling:
        return pl.pallas_call(
            _proj_kernel_resident,
            out_shape=jax.ShapeDtypeStruct((B, 1), out_dtype),
            grid=(pl.cdiv(B, tile_b),),
            in_specs=[
                pl.BlockSpec((tile_b, two_h), lambda i: (i, 0), **x_extra),  # x streamed
                pl.BlockSpec((two_h, H), lambda i: (0, 0)),                  # w1 resident
                pl.BlockSpec((1, H), lambda i: (0, 0)),                      # b1
                pl.BlockSpec((1, H), lambda i: (0, 0)),                      # w2 row
                pl.BlockSpec((1, 1), lambda i: (0, 0)),                      # b2
            ],
            out_specs=pl.BlockSpec((tile_b, 1), lambda i: (i, 0)),
            compiler_params=pltpu.CompilerParams(
                dimension_semantics=(batch_sem,),
                vmem_limit_bytes=vmem_limit),
        )(x, w1, b1_2d, w2_row, b2_2d)

    n_k = two_h // tile_k
    return pl.pallas_call(
        _proj_kernel_ktiled,
        out_shape=jax.ShapeDtypeStruct((B, 1), out_dtype),
        grid=(pl.cdiv(B, tile_b), n_k),
        in_specs=[
            pl.BlockSpec((tile_b, tile_k), lambda i, k: (i, k), **x_extra),  # x streamed
            pl.BlockSpec((tile_k, H), lambda i, k: (k, 0)),                  # w1 streamed
            pl.BlockSpec((1, H), lambda i, k: (0, 0)),                       # b1
            pl.BlockSpec((1, H), lambda i, k: (0, 0)),                       # w2 row
            pl.BlockSpec((1, 1), lambda i, k: (0, 0)),                       # b2
        ],
        out_specs=pl.BlockSpec((tile_b, 1), lambda i, k: (i, 0)),
        scratch_shapes=[pltpu.VMEM((tile_b, H), jnp.float32)],
        compiler_params=pltpu.CompilerParams(
            dimension_semantics=(batch_sem, pltpu.ARBITRARY),
            vmem_limit_bytes=vmem_limit),
    )(x, w1, b1_2d, w2_row, b2_2d)


def init_params(key, hidden_dim, dtype=jnp.float32):
    """Deterministic init mimicking nn.Linear's default U(-1/sqrt(fan_in), 1/sqrt(fan_in))."""
    k1, k2, k3, k4 = jax.random.split(key, 4)
    fan1 = 2 * hidden_dim
    bound1 = 1.0 / (fan1 ** 0.5)
    w1 = jax.random.uniform(k1, (fan1, hidden_dim), dtype, -bound1, bound1)
    b1 = jax.random.uniform(k2, (hidden_dim,), dtype, -bound1, bound1)
    fan2 = hidden_dim
    bound2 = 1.0 / (fan2 ** 0.5)
    w2 = jax.random.uniform(k3, (fan2, 1), dtype, -bound2, bound2)
    b2 = jax.random.uniform(k4, (1,), dtype, -bound2, bound2)
    return w1, b1, w2, b2


if __name__ == "__main__":
    hidden_dim = 32
    batch = 8

    key = jax.random.PRNGKey(0)
    kx, kp = jax.random.split(key)
    x = jax.random.normal(kx, (batch, 2 * hidden_dim), dtype=jnp.float32)
    w1, b1, w2, b2 = init_params(kp, hidden_dim)
    ref = jnp.maximum(x @ w1 + b1, 0.0) @ w2 + b2

    # 1) Small f32 case: resident-weight path, whole batch in a single tile.
    out = jax.block_until_ready(projection_layer(x, w1, b1, w2, b2))
    assert out.shape == (batch, 1) and out.dtype == jnp.float32
    assert jnp.allclose(out, ref, atol=1e-5, rtol=1e-5)

    # 2) Batch grid with multiple tiles plus a partial final tile.
    xb = jax.random.normal(jax.random.PRNGKey(1), (1000, 2 * hidden_dim), jnp.float32)
    outb = jax.block_until_ready(projection_layer(xb, w1, b1, w2, b2, tile_b=256))
    refb = jnp.maximum(xb @ w1 + b1, 0.0) @ w2 + b2
    assert outb.shape == (1000, 1)
    assert jnp.allclose(outb, refb, atol=1e-5, rtol=1e-5)

    # 3) bf16 inputs/weights (halves HBM traffic on all generations) with the output
    #    pinned to f32 for parity with the f32 PyTorch layer.
    out16 = jax.block_until_ready(
        projection_layer(x.astype(jnp.bfloat16), w1.astype(jnp.bfloat16),
                         b1.astype(jnp.bfloat16), w2.astype(jnp.bfloat16),
                         b2.astype(jnp.bfloat16), out_dtype=jnp.float32))
    assert out16.shape == (batch, 1) and out16.dtype == jnp.float32
    assert jnp.max(jnp.abs(out16 - ref)) < 0.1

    # 4) K-tiled reduction path (what large-H / v7x auto-selects), forced at a small
    #    shape via tile_k: 2H=256 streamed in two 128-wide chunks with an f32 acc.
    hk = 128
    xk = jax.random.normal(jax.random.PRNGKey(2), (64, 2 * hk), jnp.float32)
    w1k, b1k, w2k, b2k = init_params(jax.random.PRNGKey(3), hk)
    outk = jax.block_until_ready(projection_layer(xk, w1k, b1k, w2k, b2k, tile_k=128))
    refk = jnp.maximum(xk @ w1k + b1k, 0.0) @ w2k + b2k
    assert outk.shape == (64, 1)
    assert jnp.allclose(outk, refk, atol=1e-4, rtol=1e-4)

    print("KERNEL_OK")
</pallas_src>

<mosaic_0001>
module attributes {stable_mosaic.version = 11 : i64} {
  func.func @_proj_kernel_resident(%arg0: i32, %arg1: memref<8x64xf32, #tpu.memory_space<vmem>>, %arg2: memref<64x32xf32, #tpu.memory_space<vmem>>, %arg3: memref<1x32xf32, #tpu.memory_space<vmem>>, %arg4: memref<1x32xf32, #tpu.memory_space<vmem>>, %arg5: memref<1x1xf32, #tpu.memory_space<vmem>>, %arg6: memref<8x1xf32, #tpu.memory_space<vmem>>) attributes {dimension_semantics = [#tpu.dimension_semantics<parallel>], iteration_bounds = array<i64: 1>, scalar_prefetch = 0 : i64, scratch_operands = 0 : i64, tpu.core_type = #tpu.core_type<tc>, window_params = [{transform_indices = @transform_0, window_bounds = array<i64: 8, 64>}, {pipeline_mode = #tpu.pipeline_mode<synchronous>, transform_indices = @transform_1, window_bounds = array<i64: 64, 32>}, {pipeline_mode = #tpu.pipeline_mode<synchronous>, transform_indices = @transform_2, window_bounds = array<i64: 1, 32>}, {pipeline_mode = #tpu.pipeline_mode<synchronous>, transform_indices = @transform_3, window_bounds = array<i64: 1, 32>}, {pipeline_mode = #tpu.pipeline_mode<synchronous>, transform_indices = @transform_4, window_bounds = array<i64: 1, 1>}, {transform_indices = @transform_5, window_bounds = array<i64: 8, 1>}]} {
    %c0 = arith.constant 0 : index
    %c0_0 = arith.constant 0 : index
    %0 = vector.load %arg1[%c0, %c0_0] : memref<8x64xf32, #tpu.memory_space<vmem>>, vector<8x64xf32>
    %c0_1 = arith.constant 0 : index
    %c0_2 = arith.constant 0 : index
    %1 = vector.load %arg2[%c0_1, %c0_2] : memref<64x32xf32, #tpu.memory_space<vmem>>, vector<64x32xf32>
    %cst = arith.constant dense<0.000000e+00> : vector<8x32xf32>
    %2 = tpu.matmul %0, %1, %cst {dimension_numbers = #tpu.dot_dimension_numbers<[1], [0], [0], [1], [0, 0, 1, 1], [], []>} : vector<8x64xf32>, vector<64x32xf32>, vector<8x32xf32> -> vector<8x32xf32>
    %c0_3 = arith.constant 0 : index
    %c0_4 = arith.constant 0 : index
    %3 = vector.load %arg3[%c0_3, %c0_4] : memref<1x32xf32, #tpu.memory_space<vmem>>, vector<1x32xf32>
    %4 = vector.broadcast %3 : vector<1x32xf32> to vector<8x32xf32>
    %5 = arith.addf %2, %4 : vector<8x32xf32>
    %cst_5 = arith.constant 0.000000e+00 : f32
    %6 = vector.broadcast %cst_5 : f32 to vector<8x32xf32>
    %7 = arith.maximumf %5, %6 : vector<8x32xf32>
    %c0_6 = arith.constant 0 : index
    %c0_7 = arith.constant 0 : index
    %8 = vector.load %arg4[%c0_6, %c0_7] : memref<1x32xf32, #tpu.memory_space<vmem>>, vector<1x32xf32>
    %9 = vector.broadcast %8 : vector<1x32xf32> to vector<8x32xf32>
    %10 = arith.mulf %7, %9 : vector<8x32xf32>
    %cst_8 = arith.constant dense<0.000000e+00> : vector<8xf32>
    %11 = vector.multi_reduction <add>, %10, %cst_8 [1] : vector<8x32xf32> to vector<8xf32>
    %12 = vector.shape_cast %11 : vector<8xf32> to vector<8x1xf32>
    %c0_9 = arith.constant 0 : index
    %c0_10 = arith.constant 0 : index
    %13 = vector.load %arg5[%c0_9, %c0_10] : memref<1x1xf32, #tpu.memory_space<vmem>>, vector<1x1xf32>
    %14 = vector.broadcast %13 : vector<1x1xf32> to vector<8x1xf32>
    %15 = arith.addf %12, %14 : vector<8x1xf32>
    %c0_11 = arith.constant 0 : index
    %c0_12 = arith.constant 0 : index
    %16 = vector.load %arg6[%c0_11, %c0_12] : memref<8x1xf32, #tpu.memory_space<vmem>>, vector<8x1xf32>
    tpu.vector_store %arg6[%c0_11, %c0_12], %15 {strides = array<i32>} : memref<8x1xf32, #tpu.memory_space<vmem>>, vector<8x1xf32>,
    return
  }
  func.func @transform_0(%arg0: i32) -> (i32, i32) {
    %c0_i32 = arith.constant 0 : i32
    %c0_i32_0 = arith.constant 0 : i32
    return %arg0, %c0_i32 : i32, i32
  }
  func.func @transform_1(%arg0: i32) -> (i32, i32) {
    %c0_i32 = arith.constant 0 : i32
    %c0_i32_0 = arith.constant 0 : i32
    %c0_i32_1 = arith.constant 0 : i32
    return %c0_i32, %c0_i32_0 : i32, i32
  }
  func.func @transform_2(%arg0: i32) -> (i32, i32) {
    %c0_i32 = arith.constant 0 : i32
    %c0_i32_0 = arith.constant 0 : i32
    %c0_i32_1 = arith.constant 0 : i32
    return %c0_i32, %c0_i32_0 : i32, i32
  }
  func.func @transform_3(%arg0: i32) -> (i32, i32) {
    %c0_i32 = arith.constant 0 : i32
    %c0_i32_0 = arith.constant 0 : i32
    %c0_i32_1 = arith.constant 0 : i32
    return %c0_i32, %c0_i32_0 : i32, i32
  }
  func.func @transform_4(%arg0: i32) -> (i32, i32) {
    %c0_i32 = arith.constant 0 : i32
    %c0_i32_0 = arith.constant 0 : i32
    %c0_i32_1 = arith.constant 0 : i32
    return %c0_i32, %c0_i32_0 : i32, i32
  }
  func.func @transform_5(%arg0: i32) -> (i32, i32) {
    %c0_i32 = arith.constant 0 : i32
    %c0_i32_0 = arith.constant 0 : i32
    return %arg0, %c0_i32 : i32, i32
  }
}

</mosaic_0001>

<bundles_post_ra>
// kernel: tpu_custom_call.1
= control target key start
LH: loop header
LB: loop body
LE: loop exit
PB: predicated region body
PF: predicated region fallthrough
CT: control target
= control target key end

     0   :  { %v186_v0 = vmov 0.0|0.0   ;;  %vm187_vm0 = vmmov 0   ;;  %v188_v4 = vmov 0.0   ;;  %vm38_vm1 = vcmask 523264   ;;  %s258_s1 = inlined_call_operand.vmem [shape: f32[64,32], index: 1, kind: input, shape index: {}]   ;;  %s259_s0 = inlined_call_operand.vmem [shape: f32[8,64], index: 0, kind: input, shape index: {}]   ;;  %s260_s4 = inlined_call_operand.<no memory space> [shape: f32[1,1], index: 4, kind: input, shape index: {}]   ;;  %s261_s2 = inlined_call_operand.vmem [shape: f32[1,32], index: 2, kind: input, shape index: {}]   ;;  %s262_s3 = inlined_call_operand.vmem [shape: f32[1,32], index: 3, kind: input, shape index: {}]   ;;  %s263_s5 = inlined_call_operand.vmem [shape: f32[8,1], index: 5, kind: output, shape index: {}]  }
   0x1   :  { %171 = vmatprep.subr.bf16.mxu0 %v186_v0  ;;  %v23_v1 = vld [vmem:[%s258_s1] sm:$0xff]  ;;  %v24_v2 = vld [vmem:[%s258_s1 + $0x8] sm:$0xff]  ;;  %v25_v3 = vld [vmem:[%s258_s1 + $0x10] sm:$0xff]  ;;  %168 = vmatprep.mubr.msk.f32.mxu0 %vm187_vm0, %v188_v4  ;;  %v10_v15 = vstv %s260_s4  ;;  %vm121_vm2 = vcmask 261120   ;;  %vm133_vm3 = vcmask 7168  }
   0x2   :  { %v172_v5 = vpack.c.bf16 %v24_v2, %v23_v1  ;;  %v26_v6 = vld [vmem:[%s258_s1 + $0x18] sm:$0xff]  ;;  %v27_v8 = vld [vmem:[%s258_s1 + $0x20] sm:$0xff]  ;;  %v28_v9 = vld [vmem:[%s258_s1 + $0x28] sm:$0xff]  ;;  %11 = vst [vmem:[#allocation2] sm:$0x1] %v10_v15 }
   0x3   :  { %v175_v7 = vpack.c.bf16 %v26_v6, %v25_v3  ;;  %v178_v10 = vpack.c.bf16 %v28_v9, %v27_v8  ;;  %v29_v11 = vld [vmem:[%s258_s1 + $0x30] sm:$0xff]  ;;  %v30_v12 = vld [vmem:[%s258_s1 + $0x38] sm:$0xff]  ;;  %v22_v14 = vld [vmem:[%s259_s0] sm:$0xff] }
   0x4   :  { %173 = vmatpush3.bf16.msra.mxu0 %v172_v5  ;;  %v181_v13 = vpack.c.bf16 %v30_v12, %v29_v11  ;;  %v139_v16 = vld [vmem:[%s261_s2] ss:$0 sm:$0xff] }
   0x5   :  { %174 = vmatprep.subr.bf16.mxu0 %v186_v0  ;;  %v141_v20 = vld [vmem:[%s262_s3] ss:$0 sm:$0xff] }
   0x8   :  { %176 = vmatpush3.bf16.msra.mxu0 %v175_v7 }
   0x9   :  { %177 = vmatprep.subr.bf16.mxu0 %v186_v0  ;;  %v142_v24 = vld [vmem:[#allocation2] ss:$0 sm:$0xff] }
   0xc   :  { %179 = vmatpush3.bf16.msra.mxu0 %v178_v10 }
   0xd   :  { %180 = vmatprep.subr.bf16.mxu0 %v186_v0 }
  0x10   :  { %182 = vmatpush3.bf16.msra.mxu0 %v181_v13 }
  0x13   :  { %169 = vmatmul.mubr.msk.f32.vlgmr.msra.gmra.mrb[0].mxu0 %vm38_vm1, %v22_v14 }
  0xe6   :  { %v108_v17 = vpop.f32.mrb[0].mxu0 }
  0xe7   :  { %v109_v18 = vadd.f32 %v139_v16, %v108_v17  ;;  %v170_v19 = vpop.f32.mrb[1].mxu0 }
  0xe9   :  { %v112_v21 = vmax.f32 %v109_v18, 0.0 }
  0xeb   :  { %v120_v22 = vmul.f32 %v141_v20, %v112_v21 }
  0xed   :  { %v122_v23 = vsel %vm121_vm2, %v120_v22, 0.0 }
  0xee   :  { %123 = vadd.xlane.f32.xlu0 %v122_v23 }
 0x17b   :  { %v124_v25 = vpop.xlane.xlu0 %123 }
 0x17c   :  { %v132_v26 = vadd.f32 %v142_v24, %v124_v25 }
 0x17e   :  { %134 = vst.msk [vmem:[%s263_s5] sm:$0xff] %vm133_vm3, %v132_v26 }

</bundles_post_ra>
